<compile_context>
chip_gen: v5e
topology: v5e:2x2
jax: 0.10.0
libtpu: 0.0.40
codegen_flags: <defaults>
</compile_context>

<pallas_src>
import functools

import jax
import jax.numpy as jnp
from jax.experimental import pallas as pl
from jax.experimental.pallas import tpu as pltpu

_LANES = 128
_SUBLANES = 8
_TARGET_BLOCK_BYTES = 8 * 1024 * 1024   # per logits block; x2 when double-buffered
_MAX_SINGLE_CHUNK_C = 4096              # single-pass path up to this many classes
_DEFAULT_TILE_C = 2048                  # class-chunk width for vocab-scale C
_VMEM_LIMIT_BYTES = 32 * 1024 * 1024    # safe on v5e/v6e (128 MiB) and v7x (64 MiB)


def _round_up(v, m):
    return ((v + m - 1) // m) * m


def _lse_single_chunk_kernel(x_ref, lse_ref):
    """Per-row logsumexp when the whole class axis fits in one block."""
    x = x_ref[...].astype(jnp.float32)                       # (tn, C)
    m = jnp.max(x, axis=1, keepdims=True)
    s = jnp.sum(jnp.exp(x - m), axis=1, keepdims=True)
    lse_ref[...] = m + jnp.log(s)


def _lse_online_kernel(x_ref, lse_ref, m_sc, l_sc, *, n_cls, tile_c, masked):
    """Per-row logsumexp with a lane-resident online accumulator over C chunks.

    Grid: (row tiles [parallel], class chunks [arbitrary, innermost]).
      x_ref:   (tn, tile_c)  logits chunk
      lse_ref: (tn, 1)       per-row logsumexp (written on last chunk)
      m_sc:    (tn, 128)     per-lane running max
      l_sc:    (tn, 128)     per-lane running sum of exp(x - m)
    """
    # All program_id / num_programs calls stay at the top level of the body
    # (never inside a pl.when branch) so interpret mode can substitute them.
    c = pl.program_id(1)
    last_c = pl.num_programs(1) - 1
    base = c * tile_c                                        # first class of chunk
    is_first = c == 0
    is_last = c == last_c

    @pl.when(is_first)
    def _init():
        m_sc[...] = jnp.full_like(m_sc, -jnp.inf)
        l_sc[...] = jnp.zeros_like(l_sc)

    x = x_ref[...].astype(jnp.float32)                       # (tn, tile_c)
    tn = x.shape[0]
    n_slabs = tile_c // _LANES

    lane = jax.lax.broadcasted_iota(jnp.int32, (tn, _LANES), 1)
    slabs = []
    for k in range(n_slabs):                                 # static unrolled
        s = x[:, k * _LANES:(k + 1) * _LANES]
        if masked:
            # Only emitted when C % tile_c != 0; padded lanes -> -inf.
            rem = n_cls - base - k * _LANES                  # scalar per chunk
            s = jnp.where(lane < rem, s, -jnp.inf)
        slabs.append(s)

    # Per-chunk per-lane max: pure element-wise VPU folds (no XLU).
    chunk_max = slabs[0]
    for s in slabs[1:]:
        chunk_max = jnp.maximum(chunk_max, s)

    m_old = m_sc[...]
    m_new = jnp.maximum(m_old, chunk_max)
    l_new = l_sc[...] * jnp.exp(m_old - m_new)               # rescale once
    for s in slabs:
        l_new = l_new + jnp.exp(s - m_new)
    m_sc[...] = m_new
    l_sc[...] = l_new

    @pl.when(is_last)
    def _finalize():
        # The only cross-lane (XLU) reductions: once per row tile.
        m_lane = m_sc[...]
        l_lane = l_sc[...]
        m_row = jnp.max(m_lane, axis=1, keepdims=True)
        l_row = jnp.sum(l_lane * jnp.exp(m_lane - m_row), axis=1, keepdims=True)
        lse_ref[...] = m_row + jnp.log(l_row)


def _choose_tiles(n, c, itemsize):
    """dtype-aware tile sizes; ~8 MiB logits blocks, >= 2 row tiles if possible."""
    n_pad = _round_up(max(n, 1), _SUBLANES)
    tc = c if c <= _MAX_SINGLE_CHUNK_C else _DEFAULT_TILE_C
    lane_w = _round_up(tc, _LANES)                           # VMEM lane padding
    tn = (_TARGET_BLOCK_BYTES // (lane_w * itemsize)) // _SUBLANES * _SUBLANES
    tn = max(_SUBLANES, min(tn, n_pad))
    # v7x: keep >= 2 row tiles so the "parallel" axis feeds both TensorCores.
    if n_pad >= 2 * _SUBLANES:
        tn = min(tn, _round_up(-(-n_pad // 2), _SUBLANES))
    return tn, tc


def row_logsumexp(outputs, *, tile_n=None, tile_c=None):
    """Per-row logsumexp of a (N, C) logits matrix via a Pallas TPU kernel."""
    n, c = outputs.shape
    itemsize = jnp.dtype(outputs.dtype).itemsize
    tn, tc = _choose_tiles(n, c, itemsize)
    if tile_n is not None:
        tn = max(_SUBLANES, _round_up(tile_n, _SUBLANES))
    if tile_c is not None:
        tc = min(tile_c, c)

    if tc >= c:
        # Single-chunk path: whole class axis in one block (module's real case).
        return pl.pallas_call(
            _lse_single_chunk_kernel,
            out_shape=jax.ShapeDtypeStruct((n, 1), jnp.float32),
            grid=(pl.cdiv(n, tn),),
            in_specs=[pl.BlockSpec((tn, c), lambda i: (i, 0))],
            out_specs=pl.BlockSpec((tn, 1), lambda i: (i, 0)),
            compiler_params=pltpu.CompilerParams(
                dimension_semantics=("parallel",),
                vmem_limit_bytes=_VMEM_LIMIT_BYTES,
            ),
        )(outputs)

    if tc % _LANES != 0:
        raise ValueError(f"tile_c must be a multiple of {_LANES} when tile_c < C")

    kernel = functools.partial(
        _lse_online_kernel, n_cls=c, tile_c=tc, masked=(c % tc != 0))
    return pl.pallas_call(
        kernel,
        out_shape=jax.ShapeDtypeStruct((n, 1), jnp.float32),
        grid=(pl.cdiv(n, tn), pl.cdiv(c, tc)),
        in_specs=[pl.BlockSpec((tn, tc), lambda i, k: (i, k))],
        out_specs=pl.BlockSpec((tn, 1), lambda i, k: (i, 0)),
        scratch_shapes=[
            pltpu.VMEM((tn, _LANES), jnp.float32),
            pltpu.VMEM((tn, _LANES), jnp.float32),
        ],
        compiler_params=pltpu.CompilerParams(
            dimension_semantics=("parallel", "arbitrary"),
            vmem_limit_bytes=_VMEM_LIMIT_BYTES,
        ),
    )(outputs)


def cross_entropy_mean(outputs, y, *, tile_n=None, tile_c=None):
    """-mean_i log_softmax(outputs, axis=1)[i, y[i]]."""
    n, _ = outputs.shape
    lse = row_logsumexp(outputs, tile_n=tile_n, tile_c=tile_c)        # (n, 1)
    y2 = y.reshape(n, 1).astype(jnp.int32)
    # Target-logit gather: N elements of HBM, negligible vs the logits stream;
    # keeping it out of the kernel removes compare/select from the hot loop.
    # (Out-of-range labels are clamped here rather than erroring like torch.)
    picked = jnp.take_along_axis(outputs, y2, axis=1).astype(jnp.float32)
    return jnp.sum(lse - picked) / jnp.float32(n)


def generalizability_constraint(outputs, y, *, alpha=1.0, xloss=0.0,
                                tile_n=None, tile_c=None):
    """Forward of GeneralizabilityConstraint: celoss - alpha * xloss."""
    celoss = cross_entropy_mean(outputs, y, tile_n=tile_n, tile_c=tile_c)
    # TODO(synk): the xloss regularizer re-runs the black-box `model` on
    # gradient-modulated inputs with data-dependent boolean row selection;
    # it has no Pallas equivalent and must be supplied as a precomputed scalar.
    return celoss - alpha * xloss


if __name__ == "__main__":
    key = jax.random.PRNGKey(0)
    k1, k2, k3, k4 = jax.random.split(key, 4)

    def ref_ce(outputs, y):
        logp = jax.nn.log_softmax(outputs.astype(jnp.float32), axis=1)
        return -jnp.sum(logp[jnp.arange(outputs.shape[0]), y]) / outputs.shape[0]

    # Case 1: module-like shapes (10-class classifier), f32, default tiling
    # (single-chunk path, 2 row tiles).
    n1, c1 = 16, 10
    logits1 = jax.random.normal(k1, (n1, c1), dtype=jnp.float32)
    y1 = jax.random.randint(k2, (n1,), 0, c1, dtype=jnp.int32)
    loss1 = jax.block_until_ready(
        generalizability_constraint(logits1, y1, alpha=1.0, xloss=0.0))
    ref1 = ref_ce(logits1, y1)
    assert jnp.allclose(loss1, ref1, atol=1e-5, rtol=1e-5), (loss1, ref1)

    # Case 2: bf16 logits, forced multi-chunk online-LSE path (tc=128 over
    # C=300 -> masked last chunk; tn=8 over N=20 -> padded last row tile).
    n2, c2 = 20, 300
    logits2 = jax.random.normal(k3, (n2, c2), dtype=jnp.float32).astype(jnp.bfloat16)
    y2 = jax.random.randint(k4, (n2,), 0, c2, dtype=jnp.int32)
    loss2 = jax.block_until_ready(
        cross_entropy_mean(logits2, y2, tile_n=8, tile_c=128))
    ref2 = ref_ce(logits2, y2)
    assert jnp.allclose(loss2, ref2, atol=2e-4, rtol=2e-4), (loss2, ref2)

    print("KERNEL_OK")
</pallas_src>

<mosaic_0001>
module attributes {stable_mosaic.version = 11 : i64} {
  func.func @_lse_single_chunk_kernel(%arg0: i32, %arg1: memref<8x10xf32, #tpu.memory_space<vmem>>, %arg2: memref<8x1xf32, #tpu.memory_space<vmem>>) attributes {dimension_semantics = [#tpu.dimension_semantics<parallel>], iteration_bounds = array<i64: 2>, scalar_prefetch = 0 : i64, scratch_operands = 0 : i64, tpu.core_type = #tpu.core_type<tc>, window_params = [{transform_indices = @transform_0, window_bounds = array<i64: 8, 10>}, {transform_indices = @transform_1, window_bounds = array<i64: 8, 1>}]} {
    %c0 = arith.constant 0 : index
    %c0_0 = arith.constant 0 : index
    %0 = vector.load %arg1[%c0, %c0_0] : memref<8x10xf32, #tpu.memory_space<vmem>>, vector<8x10xf32>
    %cst = arith.constant dense<0xFF800000> : vector<8xf32>
    %1 = vector.multi_reduction <maximumf>, %0, %cst [1] : vector<8x10xf32> to vector<8xf32>
    %2 = vector.shape_cast %1 : vector<8xf32> to vector<8x1xf32>
    %3 = vector.broadcast %2 : vector<8x1xf32> to vector<8x10xf32>
    %4 = arith.subf %0, %3 : vector<8x10xf32>
    %5 = math.exp %4 : vector<8x10xf32>
    %cst_1 = arith.constant dense<0.000000e+00> : vector<8xf32>
    %6 = vector.multi_reduction <add>, %5, %cst_1 [1] : vector<8x10xf32> to vector<8xf32>
    %7 = vector.shape_cast %6 : vector<8xf32> to vector<8x1xf32>
    %8 = math.log %7 : vector<8x1xf32>
    %9 = arith.addf %2, %8 : vector<8x1xf32>
    %c0_2 = arith.constant 0 : index
    %c0_3 = arith.constant 0 : index
    %10 = vector.load %arg2[%c0_2, %c0_3] : memref<8x1xf32, #tpu.memory_space<vmem>>, vector<8x1xf32>
    tpu.vector_store %arg2[%c0_2, %c0_3], %9 {strides = array<i32>} : memref<8x1xf32, #tpu.memory_space<vmem>>, vector<8x1xf32>,
    return
  }
  func.func @transform_0(%arg0: i32) -> (i32, i32) {
    %c0_i32 = arith.constant 0 : i32
    %c0_i32_0 = arith.constant 0 : i32
    return %arg0, %c0_i32 : i32, i32
  }
  func.func @transform_1(%arg0: i32) -> (i32, i32) {
    %c0_i32 = arith.constant 0 : i32
    %c0_i32_0 = arith.constant 0 : i32
    return %arg0, %c0_i32 : i32, i32
  }
}

</mosaic_0001>

<bundles_post_ra>
// kernel: tpu_custom_call.1
= control target key start
LH: loop header
LB: loop body
LE: loop exit
PB: predicated region body
PF: predicated region fallthrough
CT: control target
= control target key end

     0   :  { %6 = vsyncpa [#allocation3], 0  ;;  %s438_s0 = inlined_call_operand.hbm [shape: f32[16,10], index: 0, kind: input, shape index: {}]   ;;  %s439_s1 = inlined_call_operand.vmem [shape: f32[16,1], index: 1, kind: output, shape index: {}]  }
   0x1   :  { %8 = vsyncpa [#allocation3 + $0x1], 0  ;;  %s344_s6 = smov 0   ;;  %s346_s7 = smov 0  }
   0x2   :  { %s348_s8 = smov 0   ;;  %s350_s9 = smov 0  }
   0x3 LB: > { %s363_s10 = sadd.s32 4294967295, %s332_s9   ;;  %s366_s11 = sadd.s32 1, %s332_s9   ;;  %s332_s9 = sphi %s350_s9, %s446_s9   ;;  %s328_s8 = sphi %s348_s8, %s445_s8   ;;  %s324_s7 = sphi %s346_s7, %s444_s7   ;;  %s320_s6 = sphi %s344_s6, %s443_s6  }
   0x4   : > { %s18_s12 = ssub.s32 %s332_s9, %s366_s11  ;;  %s21_s13 = sadd.s32 1, %s328_s8 }
   0x5   : > { %p19_p0 = scmp.eq.s32.totalorder %s18_s12, 0  ;;  %p28_p1 = scmp.ne.s32.totalorder %s328_s8, %s324_s7 }
   0x6   : > { %p29_p2 = scmp.eq.s32.totalorder %s332_s9, 0  ;;  %p34_p3 = scmp.ne.s32.totalorder %s324_s7, %s320_s6 }
   0x7   : > { %s376_s14 = scalar_select %p19_p0, %s328_s8, %s21_s13  }
   0x8   : > { %p378_p4 = por %p29_p2, %p28_p1  ;;  %p35_p5 = scmp.eq.s32.totalorder %s363_s10, 0 }
   0x9   : > { %p231_p6 = scmp.lt.s32.totalorder %s332_s9, 2  ;;  %s84_s17 = sand.u32 1, %s328_s8  }
   0xa   : > { %p384_p7 = por %p35_p5, %p34_p3  ;;  %s218_s18 = sshll.u32 %s84_s17, 3 }
   0xb   : > { %s219_s19 = sshll.u32 %s332_s9, 3  ;;  %s88_s23 = scalar_lea.vmem [#allocation2], %s218_s18 }
   0xc   : > { %s92_s22 = scalar_lea.hbm %s438_s0, %s219_s19  ;;  %s96_s24 = sshll.u32 %s88_s23, 4  ;;  %s97_s24 = int_to_ptr.vmem [resolvable:$true] %s96_s24 }
   0xd   : > { %s94_s25 = sshll.u32 %s92_s22, 4  ;;  %p395_p8 = pnand %p231_p6, %p378_p4  ;;  %s95_s25 = int_to_ptr.hbm [resolvable:$true] %s94_s25 }
   0xe   : > { %p220_p9 = scmp.ge.s32.totalorder %s332_s9, 1  ;;  %p101_p10 = scmp.lt.s32.totalorder %s332_s9, 3 }
   0xf   : > { %s85_s27 = scalar_lea.sflag [#allocation3], %s84_s17  ;;  %s268_s28 = sshra.s32 %s95_s25, 4  ;;  %s269_s28 = int_to_ptr.hbm [resolvable:$true] %s268_s28 }
  0x10   : > { %s270_s29 = scalar_lea.hbm %s269_s28, 8  ;;  %p272_p12 = pneg %p395_p8 }
  0x11   : > { %p271_p11 = scmp.ne.s32.totalorder %s269_s28, %s270_s29  ;;  %s275_s3 = scalar_lea.hbm %s438_s0, 16 }
  0x12   : > { %p276_p1 = scmp.lt.s32.totalorder %s269_s28, %s438_s0  ;;  %p277_p2 = scmp.lt.s32.totalorder %s275_s3, %s270_s29 }
  0x13   : > { %p273_p13 = pnand %p272_p12, %p271_p11 }
  0x14   : > { %p278_p3 = por %p277_p2, %p276_p1 }
  0x15   : > { %p274_p0 = pneg %p273_p13 }
  0x17   : > { %p279_p4 = pnand %p278_p3, %p274_p0 }
  0x19   : > { %282 = shalt.err (!%p279_p4)
}
  0x1a   : > { %230 = dma.hbm_to_vmem [thread:$0]  (!%p395_p8), %s95_s25, 128, %s97_s24, %s85_s27  }
  0x1b   : > { %p102_p5 = pnand %p220_p9, %p101_p10 }
  0x1c   : > { %s107_s6 = sand.u32 (!%p102_p5), 1, %s324_s7  }
  0x1d   : > { %105 = sbr.rel (%p102_p5) target bundleno = 293 (0x125), region = 24  ;;  %s221_s12 = sshll.u32 (!%p102_p5), %s107_s6, 3 }
  0x1e   : > { %s108_s13 = scalar_lea.sflag (!%p102_p5), [#allocation3], %s107_s6  ;;  %s111_s15 = scalar_lea.vmem (!%p102_p5), [#allocation2], %s221_s12 }
  0x22   : > { %315 = dma.done.wait (%p384_p7), %s108_s13, 128  }
  0x23   : > { %317 = vsyncadd (%p384_p7), %s108_s13, 4294967168  ;;  %vm135_vm0 = vcmask 80896   ;;  %v134_v0 = vld [vmem:[%s111_s15] sm:$0xff]  ;;  %p130_p6 = scmp.lt.s32.totalorder %s363_s10, 1  ;;  %vm148_vm1 = vcmask 7168  }
  0x24   : > { %v136_v1 = vsel %vm135_vm0, %v134_v0, -inf }
  0x25   : > { %137 = vmax.xlane.f32.xlu0 %v136_v1  ;;  %s448_s10 = smov (!%p130_p6, %s363_s10), 1 }
  0x26   : > { %s222_s9 = sshll.u32 %s448_s10, 3 }
  0x27   : > { %s133_s18 = scalar_lea.vmem %s439_s1, %s222_s9 }
  0x98   : > { %v138_v2 = vpop.xlane.xlu0 %137 }
  0x99   : > { %v139_v3 = vsub.f32 %v134_v0, %v138_v2 }
  0x9b   : > { %v140_v4 = vmul.f32 1.442695, %v139_v3 }
  0x9d   : > { %264 = vpow2.f32 %v140_v4 }
  0xa3   : > { %v265_v5 = vpop.eup %264 }
  0xa4   : > { %v142_v6 = vsel %vm135_vm0, %v265_v5, 0.0 }
  0xa5   : > { %143 = vadd.xlane.f32.xlu0 %v142_v6 }
 0x118   : > { %v144_v7 = vpop.xlane.xlu0 %143 }
 0x119   : > { %266 = vlog2.f32 %v144_v7 }
 0x11f   : > { %v267_v8 = vpop.eup %266 }
 0x120   : > { %v146_v9 = vmul.f32 0.6931472, %v267_v8 }
 0x122   : > { %v147_v10 = vadd.f32 %v146_v9, %v138_v2 }
 0x124   : > { %149 = vst.msk [vmem:[%s133_s18] sm:$0xff] %vm148_vm1, %v147_v10 }
 0x125 PF: > { %p11_p7 = scmp.ge.s32.totalorder %s366_s11, 4   ;;  %s443_s6 = smov %s324_s7 }
 0x126   : > { %s444_s7 = smov %s328_s8  ;;  %s445_s8 = smov %s376_s14 }
 0x127   : > { %s446_s9 = smov %s366_s11  ;;  %13 = sbr.rel (!%p11_p7) target bundleno = 3 (0x3), region = 64 }
 0x12c   :  { %169 = vsyncpa [#allocation3], 1 }
 0x12d   :  { %171 = vsyncpa [#allocation3 + $0x1], 1 }

</bundles_post_ra>
